<compile_context>
chip_gen: v5e
topology: v5e:2x2
jax: 0.10.0
libtpu: 0.0.40
codegen_flags: <defaults>
</compile_context>

<pallas_src>
import functools
import math

import jax
import jax.numpy as jnp
from jax import lax
from jax.experimental import pallas as pl
from jax.experimental.pallas import tpu as pltpu

EPS = 1e-5      # nn.BatchNorm2d / nn.InstanceNorm2d default eps
LEAK = 0.2      # nn.LeakyReLU(0.2) in the module
LANES = 128


# ----------------------------------------------------------------------------
# compiler params / tiling helpers
# ----------------------------------------------------------------------------
def _default_vmem_limit():
    """~3/4 of physical VMEM (96 MiB v5e/v6e, 48 MiB v7x); None if unknown."""
    try:
        cap = int(pltpu.get_tpu_info().vmem_capacity_bytes)
    except Exception:
        return None
    return min((cap * 3) // 4, 110 * 1024 * 1024)


_VMEM_LIMIT = _default_vmem_limit()


def _compiler_params():
    kw = dict(dimension_semantics=("parallel", "parallel"))
    if _VMEM_LIMIT is not None:
        kw["vmem_limit_bytes"] = int(_VMEM_LIMIT)
    return pltpu.CompilerParams(**kw)


def _pick_tile_rows(H, W, K_pad, C_pad, pool):
    """Largest divisor of H (image rows per tile) whose per-grid-step working set
    fits a conservative VMEM budget and keeps block shapes sublane-aligned."""
    budget = 16 * 1024 * 1024

    def valid(th):
        if pool and th % 2:
            return False
        if th == H:
            return True
        tm = th * W
        if tm % 8:
            return False
        if pool and ((th // 2) * (W // 2)) % 8:
            return False
        return True

    def footprint(th):
        tm = th * W
        tmo = (th // 2) * (W // 2) if pool else tm
        return (2 * tm * K_pad * 2        # im2col lhs bf16, double buffered
                + 2 * tm * C_pad * 2      # y intermediate bf16, double buffered
                + 2 * tmo * C_pad * 2     # output bf16, double buffered
                + tm * C_pad * 4          # f32 working values
                + 2 * K_pad * C_pad * 2)  # weights bf16

    divs = [d for d in range(H, 0, -1) if H % d == 0 and valid(d)]
    for d in divs:
        if footprint(d) <= budget:
            return d
    return divs[-1] if divs else H


# ----------------------------------------------------------------------------
# in-kernel helpers (trace-time Python)
# ----------------------------------------------------------------------------
def _act(x, activation):
    if activation == "ReLU":
        return jnp.maximum(x, 0.0)
    if activation == "Leaky":
        return jnp.where(x > 0, x, LEAK * x)
    return x


def _pool2x2(y, TH, W):
    """2x2 / stride-2 max pool of y = (TH*W, C).

    Rows are ordered (h, w) with w pre-permuted by the wrapper to
    [0,2,...,W-2, 1,3,...,W-1], so both pooling steps are aligned sublane-slice
    maxima (no scratch round trip, no strided reads)."""
    Wo, THo = W // 2, TH // 2
    C = y.shape[-1]
    y3 = y.reshape(TH, W, C)
    wm = jnp.maximum(y3[:, :Wo, :], y3[:, Wo:, :])            # pool over w
    hm = wm.reshape(THo, 2 * Wo, C)
    return jnp.maximum(hm[:, :Wo, :], hm[:, Wo:, :]).reshape(THo * Wo, C)


# ----------------------------------------------------------------------------
# kernels
# ----------------------------------------------------------------------------
def _conv_fused_kernel(p_ref, w_ref, b_ref, o_ref, *, TH, W, activation, pool, instance):
    """conv (one MXU contraction) + bias + (InstanceNorm) + activation + (pool)."""
    y = jnp.dot(p_ref[0], w_ref[...], preferred_element_type=jnp.float32) + b_ref[...]
    if instance:                 # whole sample lives in this tile (n_tiles == 1)
        mean = jnp.mean(y, axis=0, keepdims=True)
        var = jnp.mean(jnp.square(y - mean), axis=0, keepdims=True)
        y = (y - mean) * lax.rsqrt(var + EPS)
    y = _act(y, activation)
    if pool:
        y = _pool2x2(y, TH, W)
    o_ref[0] = y.astype(o_ref.dtype)


def _conv_moments_kernel(p_ref, w_ref, b_ref, y_ref, s_ref, ss_ref):
    """norm pass 1: conv + bias, emit bf16 y + per-tile channel sum / sum-of-squares."""
    y = jnp.dot(p_ref[0], w_ref[...], preferred_element_type=jnp.float32) + b_ref[...]
    y_ref[0] = y.astype(y_ref.dtype)
    s_ref[0] = jnp.sum(y, axis=0, keepdims=True)
    ss_ref[0] = jnp.sum(y * y, axis=0, keepdims=True)


def _norm_act_pool_kernel(y_ref, scale_ref, shift_ref, o_ref, *, TH, W, activation, pool):
    """norm pass 2: y * scale + shift -> activation -> (pool)."""
    y = y_ref[0].astype(jnp.float32) * scale_ref[0] + shift_ref[0]
    y = _act(y, activation)
    if pool:
        y = _pool2x2(y, TH, W)
    o_ref[0] = y.astype(o_ref.dtype)


# ----------------------------------------------------------------------------
# BasicConv.forward
# ----------------------------------------------------------------------------
@functools.partial(jax.jit, static_argnames=("pool", "norm", "activation", "tile_rows"))
def basic_conv_forward(x_nchw, w, b, pool=False, norm=None, activation=None,
                       tile_rows=None):
    """Matches BasicConv.forward(x, pool, norm, activation). x: (N, C_in, H, W) f32."""
    N, C_in, H, W = x_nchw.shape
    C_out, C_in_w, kH, kW = w.shape
    assert (kH, kW) == (3, 3) and C_in_w == C_in, \
        "only kernel_size=3 / stride=1 / padding=1 (the module defaults) supported"
    if pool:
        assert H % 2 == 0 and W % 2 == 0, "MaxPool2d(2,2) path needs even H, W"

    K = 9 * C_in
    K_pad = pl.cdiv(K, LANES) * LANES
    C_pad = pl.cdiv(C_out, LANES) * LANES
    M = H * W
    Ho, Wo = (H // 2, W // 2) if pool else (H, W)
    M_out = Ho * Wo

    if tile_rows is not None:
        TH = int(tile_rows)
        assert H % TH == 0 and (not pool or TH % 2 == 0)
        assert TH == H or (TH * W) % 8 == 0
        assert TH == H or not pool or ((TH // 2) * Wo) % 8 == 0
    else:
        TH = _pick_tile_rows(H, W, K_pad, C_pad, pool)
    n_tiles = H // TH
    TM = TH * W
    TM_out = (TH // 2) * Wo if pool else TM

    # ---- wrapper-side im2col (lane-dense K), cheap XLA glue on the small input ----
    x_pad = jnp.pad(jnp.transpose(x_nchw, (0, 2, 3, 1)),
                    ((0, 0), (1, 1), (1, 1), (0, 0))).astype(jnp.bfloat16)
    taps = [x_pad[:, kh:kh + H, kw:kw + W, :] for kh in range(3) for kw in range(3)]
    patches = jnp.concatenate(taps, axis=-1)                         # (N, H, W, 9*C_in)
    if pool:
        # permute w -> [evens | odds] so the in-kernel pool is aligned slice-maxes
        patches = jnp.concatenate(
            [patches[:, :, 0::2, :], patches[:, :, 1::2, :]], axis=2)
    patches = jnp.pad(patches, ((0, 0), (0, 0), (0, 0), (0, K_pad - K)))
    patches = patches.reshape(N, M, K_pad)                           # bf16, lane-dense K

    w_mat = jnp.transpose(w, (2, 3, 1, 0)).reshape(K, C_out)         # (kh,kw,ci) x co
    w_mat = jnp.pad(w_mat, ((0, K_pad - K), (0, C_pad - C_out))).astype(jnp.bfloat16)
    b_row = jnp.pad(b, (0, C_pad - C_out)).reshape(1, C_pad).astype(jnp.float32)

    p_spec = pl.BlockSpec((1, TM, K_pad), lambda n, m: (n, m, 0))
    w_spec = pl.BlockSpec((K_pad, C_pad), lambda n, m: (0, 0))
    b_spec = pl.BlockSpec((1, C_pad), lambda n, m: (0, 0))
    y_spec = pl.BlockSpec((1, TM, C_pad), lambda n, m: (n, m, 0))
    out_spec = pl.BlockSpec((1, TM_out, C_pad), lambda n, m: (n, m, 0))
    mom_spec = pl.BlockSpec((1, 1, C_pad), lambda n, m: (n * n_tiles + m, 0, 0))
    params = _compiler_params()

    two_pass = norm == "Batch" or (norm == "Instance" and n_tiles > 1)

    if two_pass:
        y, s, ss = pl.pallas_call(
            _conv_moments_kernel,
            out_shape=(jax.ShapeDtypeStruct((N, M, C_pad), jnp.bfloat16),
                       jax.ShapeDtypeStruct((N * n_tiles, 1, C_pad), jnp.float32),
                       jax.ShapeDtypeStruct((N * n_tiles, 1, C_pad), jnp.float32)),
            grid=(N, n_tiles),
            in_specs=[p_spec, w_spec, b_spec],
            out_specs=(y_spec, mom_spec, mom_spec),
            compiler_params=params,
        )(patches, w_mat, b_row)

        s = s.reshape(N, n_tiles, C_pad)
        ss = ss.reshape(N, n_tiles, C_pad)
        if norm == "Batch":
            cnt = float(N * M)
            mean = jnp.sum(s, axis=(0, 1)) / cnt                                # (C_pad,)
            var = jnp.maximum(jnp.sum(ss, axis=(0, 1)) / cnt - mean * mean, 0.0)
            scale = lax.rsqrt(var + EPS).reshape(1, 1, C_pad)
            shift = (-mean * lax.rsqrt(var + EPS)).reshape(1, 1, C_pad)
            ns_spec = pl.BlockSpec((1, 1, C_pad), lambda n, m: (0, 0, 0))
        else:  # tiled InstanceNorm (per-sample moments)
            cnt = float(M)
            mean = jnp.sum(s, axis=1, keepdims=True) / cnt                      # (N,1,C)
            var = jnp.maximum(jnp.sum(ss, axis=1, keepdims=True) / cnt - mean * mean, 0.0)
            scale = lax.rsqrt(var + EPS)
            shift = -mean * scale
            ns_spec = pl.BlockSpec((1, 1, C_pad), lambda n, m: (n, 0, 0))

        out = pl.pallas_call(
            functools.partial(_norm_act_pool_kernel, TH=TH, W=W,
                              activation=activation, pool=pool),
            out_shape=jax.ShapeDtypeStruct((N, M_out, C_pad), jnp.bfloat16),
            grid=(N, n_tiles),
            in_specs=[y_spec, ns_spec, ns_spec],
            out_specs=out_spec,
            compiler_params=params,
        )(y, scale, shift)
    else:
        out = pl.pallas_call(
            functools.partial(_conv_fused_kernel, TH=TH, W=W, activation=activation,
                              pool=pool, instance=(norm == "Instance")),
            out_shape=jax.ShapeDtypeStruct((N, M_out, C_pad), jnp.bfloat16),
            grid=(N, n_tiles),
            in_specs=[p_spec, w_spec, b_spec],
            out_specs=out_spec,
            compiler_params=params,
        )(patches, w_mat, b_row)

    out = out.reshape(N, Ho, Wo, C_pad)[..., :C_out].astype(jnp.float32)
    return jnp.transpose(out, (0, 3, 1, 2))                                   # NCHW


# ----------------------------------------------------------------------------
# demo / smoke test
# ----------------------------------------------------------------------------
if __name__ == "__main__":
    N, C_in, H, W = 2, 4, 16, 16
    C_out = 32

    key = jax.random.PRNGKey(0)
    kx, kw_, kb = jax.random.split(key, 3)
    x = jax.random.normal(kx, (N, C_in, H, W), jnp.float32)

    fan_in = C_in * 3 * 3
    bound = 1.0 / math.sqrt(fan_in)
    w = jax.random.uniform(kw_, (C_out, C_in, 3, 3), jnp.float32, -bound, bound)
    b = jax.random.uniform(kb, (C_out,), jnp.float32, -bound, bound)

    out0 = jax.block_until_ready(basic_conv_forward(x, w, b))
    out1 = jax.block_until_ready(
        basic_conv_forward(x, w, b, pool=True, norm="Batch", activation="ReLU"))
    out2 = jax.block_until_ready(
        basic_conv_forward(x, w, b, pool=False, norm="Instance", activation="Leaky"))
    out3 = jax.block_until_ready(
        basic_conv_forward(x, w, b, pool=True, norm=None, activation="Leaky"))
    # multi-tile grid paths (forced small row-tile)
    out4 = jax.block_until_ready(
        basic_conv_forward(x, w, b, pool=True, norm="Instance", activation="ReLU",
                           tile_rows=4))
    out5 = jax.block_until_ready(
        basic_conv_forward(x, w, b, pool=True, norm=None, activation=None, tile_rows=4))

    assert out0.shape == (N, C_out, H, W)
    assert out1.shape == (N, C_out, H // 2, W // 2)
    assert out2.shape == (N, C_out, H, W)
    assert out3.shape == (N, C_out, H // 2, W // 2)
    assert out4.shape == (N, C_out, H // 2, W // 2)
    assert out5.shape == (N, C_out, H // 2, W // 2)

    # ---- pure-JAX references (same bf16-quantized conv operands, f32 accumulation) ----
    xq = x.astype(jnp.bfloat16).astype(jnp.float32)
    wq = w.astype(jnp.bfloat16).astype(jnp.float32)
    conv_ref = lax.conv_general_dilated(
        xq, wq, window_strides=(1, 1), padding=((1, 1), (1, 1)),
        dimension_numbers=("NCHW", "OIHW", "NCHW")) + b.reshape(1, C_out, 1, 1)

    def maxpool_ref(t):
        return lax.reduce_window(t, -jnp.inf, lax.max, (1, 1, 2, 2), (1, 1, 2, 2), "VALID")

    def relu(t):
        return jnp.maximum(t, 0.0)

    def leaky(t):
        return jnp.where(t > 0, t, LEAK * t)

    err0 = float(jnp.max(jnp.abs(out0 - conv_ref)))

    m = conv_ref.mean(axis=(0, 2, 3), keepdims=True)
    v = ((conv_ref - m) ** 2).mean(axis=(0, 2, 3), keepdims=True)
    ref1 = maxpool_ref(relu((conv_ref - m) * lax.rsqrt(v + EPS)))
    err1 = float(jnp.max(jnp.abs(out1 - ref1)))

    mi = conv_ref.mean(axis=(2, 3), keepdims=True)
    vi = ((conv_ref - mi) ** 2).mean(axis=(2, 3), keepdims=True)
    inorm = (conv_ref - mi) * lax.rsqrt(vi + EPS)
    ref2 = leaky(inorm)
    err2 = float(jnp.max(jnp.abs(out2 - ref2)))

    ref3 = maxpool_ref(leaky(conv_ref))
    err3 = float(jnp.max(jnp.abs(out3 - ref3)))

    ref4 = maxpool_ref(relu(inorm))
    err4 = float(jnp.max(jnp.abs(out4 - ref4)))

    ref5 = maxpool_ref(conv_ref)
    err5 = float(jnp.max(jnp.abs(out5 - ref5)))

    for name, e in (("conv", err0), ("batch", err1), ("instance", err2),
                    ("pool", err3), ("instance_tiled", err4), ("pool_tiled", err5)):
        assert e < 5e-2, f"{name} path mismatch: max abs err {e}"

    print("KERNEL_OK")
</pallas_src>

<mosaic_0001>
module attributes {stable_mosaic.version = 11 : i64} {
  func.func @_conv_fused_kernel(%arg0: i32, %arg1: i32, %arg2: memref<1x256x128xbf16, #tpu.memory_space<vmem>>, %arg3: memref<128x128xbf16, #tpu.memory_space<vmem>>, %arg4: memref<1x128xf32, #tpu.memory_space<vmem>>, %arg5: memref<1x256x128xbf16, #tpu.memory_space<vmem>>) attributes {dimension_semantics = [#tpu.dimension_semantics<parallel>, #tpu.dimension_semantics<parallel>], iteration_bounds = array<i64: 2, 1>, scalar_prefetch = 0 : i64, scratch_operands = 0 : i64, tpu.core_type = #tpu.core_type<tc>, window_params = [{transform_indices = @transform_0, window_bounds = array<i64: 1, 256, 128>}, {pipeline_mode = #tpu.pipeline_mode<synchronous>, transform_indices = @transform_1, window_bounds = array<i64: 128, 128>}, {pipeline_mode = #tpu.pipeline_mode<synchronous>, transform_indices = @transform_2, window_bounds = array<i64: 1, 128>}, {transform_indices = @transform_3, window_bounds = array<i64: 1, 256, 128>}]} {
    %c0 = arith.constant 0 : index
    %c0_0 = arith.constant 0 : index
    %c0_1 = arith.constant 0 : index
    %0 = vector.load %arg2[%c0, %c0_0, %c0_1] : memref<1x256x128xbf16, #tpu.memory_space<vmem>>, vector<1x256x128xbf16>
    %1 = vector.shape_cast %0 : vector<1x256x128xbf16> to vector<256x128xbf16>
    %c0_2 = arith.constant 0 : index
    %c0_3 = arith.constant 0 : index
    %2 = vector.load %arg3[%c0_2, %c0_3] : memref<128x128xbf16, #tpu.memory_space<vmem>>, vector<128x128xbf16>
    %cst = arith.constant dense<0.000000e+00> : vector<256x128xf32>
    %3 = tpu.matmul %1, %2, %cst {dimension_numbers = #tpu.dot_dimension_numbers<[1], [0], [0], [1], [0, 0, 1, 1], [], []>} : vector<256x128xbf16>, vector<128x128xbf16>, vector<256x128xf32> -> vector<256x128xf32>
    %c0_4 = arith.constant 0 : index
    %c0_5 = arith.constant 0 : index
    %4 = vector.load %arg4[%c0_4, %c0_5] : memref<1x128xf32, #tpu.memory_space<vmem>>, vector<1x128xf32>
    %5 = vector.broadcast %4 : vector<1x128xf32> to vector<256x128xf32>
    %6 = arith.addf %3, %5 : vector<256x128xf32>
    %7 = arith.truncf %6 : vector<256x128xf32> to vector<256x128xbf16>
    %c0_6 = arith.constant 0 : index
    %c0_7 = arith.constant 0 : index
    %c0_8 = arith.constant 0 : index
    %8 = vector.load %arg5[%c0_6, %c0_7, %c0_8] : memref<1x256x128xbf16, #tpu.memory_space<vmem>>, vector<1x256x128xbf16>
    %9 = vector.shape_cast %8 : vector<1x256x128xbf16> to vector<256x128xbf16>
    %10 = vector.shape_cast %7 : vector<256x128xbf16> to vector<1x256x128xbf16>
    tpu.vector_store %arg5[%c0_6, %c0_7, %c0_8], %10 {strides = array<i32>} : memref<1x256x128xbf16, #tpu.memory_space<vmem>>, vector<1x256x128xbf16>,
    return
  }
  func.func @transform_0(%arg0: i32, %arg1: i32) -> (i32, i32, i32) {
    %c0_i32 = arith.constant 0 : i32
    %c0_i32_0 = arith.constant 0 : i32
    return %arg0, %arg1, %c0_i32 : i32, i32, i32
  }
  func.func @transform_1(%arg0: i32, %arg1: i32) -> (i32, i32) {
    %c0_i32 = arith.constant 0 : i32
    %c0_i32_0 = arith.constant 0 : i32
    %c0_i32_1 = arith.constant 0 : i32
    return %c0_i32, %c0_i32_0 : i32, i32
  }
  func.func @transform_2(%arg0: i32, %arg1: i32) -> (i32, i32) {
    %c0_i32 = arith.constant 0 : i32
    %c0_i32_0 = arith.constant 0 : i32
    %c0_i32_1 = arith.constant 0 : i32
    return %c0_i32, %c0_i32_0 : i32, i32
  }
  func.func @transform_3(%arg0: i32, %arg1: i32) -> (i32, i32, i32) {
    %c0_i32 = arith.constant 0 : i32
    %c0_i32_0 = arith.constant 0 : i32
    return %arg0, %arg1, %c0_i32 : i32, i32, i32
  }
}

</mosaic_0001>

<bundles_post_ra>
// kernel: basic_conv_forward.1
= control target key start
LH: loop header
LB: loop body
LE: loop exit
PB: predicated region body
PF: predicated region fallthrough
CT: control target
= control target key end

     0   :  { %s967_s12 = smov 0   ;;  %s969_s13 = smov 0   ;;  %s1108_s0 = inlined_call_operand.vmem [shape: bf16[2,256,128], index: 0, kind: input, shape index: {}]   ;;  %s1109_s1 = inlined_call_operand.vmem [shape: bf16[128,128], index: 1, kind: input, shape index: {}]   ;;  %s1110_s2 = inlined_call_operand.vmem [shape: f32[1,128], index: 2, kind: input, shape index: {}]   ;;  %s1111_s3 = inlined_call_operand.vmem [shape: bf16[2,256,128], index: 3, kind: output, shape index: {}]  }
   0x1   :  { %s971_s14 = smov 0  }
   0x2 LB: > { %s25_s15 = sadd.s32 1, %s941_s13  ;;  %p650_p0 = scmp.ge.s32.totalorder %s945_s14, 1  ;;  %s945_s14 = sphi %s971_s14, %s13_s14   ;;  %s941_s13 = sphi %s969_s13, %s1113_s13   ;;  %s937_s12 = sphi %s967_s12, %s1112_s12  }
   0x3   : > { %p27_p1 = scmp.ge.s32.totalorder %s25_s15, 2  ;;  %p158_p2 = scmp.lt.s32.totalorder %s945_s14, 3 }
   0x5   : > { %s1115_s15 = smov (%p27_p1, %s25_s15), 0  ;;  %p159_p3 = pnand %p650_p0, %p158_p2 }
   0x6   : > { %p191_p4 = scmp.lt.s32.totalorder (!%p159_p3), %s937_s12, 1 }
   0x7   : > { %162 = sbr.rel (%p159_p3) target bundleno = 239 (0xef), region = 32 }
   0xc   : > { %v778_v0 = vld [vmem:[%s1109_s1 + $0x38] sm:$0xff]  ;;  %v777_v1 = vld [vmem:[%s1109_s1 + $0x30] sm:$0xff]  ;;  %v776_v2 = vld [vmem:[%s1109_s1 + $0x28] sm:$0xff]  ;;  %s1117_s12 = smov (!%p191_p4, %s937_s12), 1 }
   0xd   : > { %406 = vmatpush.bf16.msra.mxu0 %v778_v0  ;;  %874 = vmatpush.bf16.msra.mxu1 %v778_v0  ;;  %v775_v3 = vld [vmem:[%s1109_s1 + $0x20] sm:$0xff]  ;;  %v774_v4 = vld [vmem:[%s1109_s1 + $0x18] sm:$0xff]  ;;  %v773_v5 = vld [vmem:[%s1109_s1 + $0x10] sm:$0xff]  ;;  %s753_s30 = sshll.u32 %s1117_s12, 7 }
   0xe   : > { %875 = vmatpush.bf16.msra.mxu2 %v778_v0  ;;  %876 = vmatpush.bf16.msra.mxu3 %v778_v0  ;;  %v772_v6 = vld [vmem:[%s1109_s1 + $0x8] sm:$0xff]  ;;  %v771_v7 = vld [vmem:[%s1109_s1] sm:$0xff]  ;;  %s1021_s8 = scalar_lea.vmem %s1108_s0, %s753_s30  ;;  %s1053_s17 = scalar_lea.vmem %s1111_s3, %s753_s30 }
   0xf   : > { %v755_v8 = vld [vmem:[%s1021_s8] sm:$0xff]  ;;  %v756_v12 = vld [vmem:[%s1021_s8 + $0x8] sm:$0xff]  ;;  %v757_v16 = vld [vmem:[%s1021_s8 + $0x10] sm:$0xff] }
  0x10   : > { %v759_v9 = vld [vmem:[%s1021_s8 + $0x20] sm:$0xff]  ;;  %v760_v13 = vld [vmem:[%s1021_s8 + $0x28] sm:$0xff]  ;;  %v761_v17 = vld [vmem:[%s1021_s8 + $0x30] sm:$0xff] }
  0x11   : > { %407 = vmatpush.bf16.msra.mxu0 %v777_v1  ;;  %877 = vmatpush.bf16.msra.mxu1 %v777_v1  ;;  %v763_v10 = vld [vmem:[%s1021_s8 + $0x40] sm:$0xff]  ;;  %v764_v14 = vld [vmem:[%s1021_s8 + $0x48] sm:$0xff]  ;;  %v765_v18 = vld [vmem:[%s1021_s8 + $0x50] sm:$0xff] }
  0x12   : > { %878 = vmatpush.bf16.msra.mxu2 %v777_v1  ;;  %879 = vmatpush.bf16.msra.mxu3 %v777_v1  ;;  %v767_v11 = vld [vmem:[%s1021_s8 + $0x60] sm:$0xff]  ;;  %v768_v15 = vld [vmem:[%s1021_s8 + $0x68] sm:$0xff]  ;;  %v769_v19 = vld [vmem:[%s1021_s8 + $0x70] sm:$0xff] }
  0x13   : > { %v758_v20 = vld [vmem:[%s1021_s8 + $0x18] sm:$0xff]  ;;  %v1042_v26 = vld [vmem:[%s1110_s2] ss:$0 sm:$0xff] }
  0x14   : > { %v762_v21 = vld [vmem:[%s1021_s8 + $0x38] sm:$0xff] }
  0x15   : > { %408 = vmatpush.bf16.msra.mxu0 %v776_v2  ;;  %880 = vmatpush.bf16.msra.mxu1 %v776_v2  ;;  %v766_v22 = vld [vmem:[%s1021_s8 + $0x58] sm:$0xff] }
  0x16   : > { %881 = vmatpush.bf16.msra.mxu2 %v776_v2  ;;  %882 = vmatpush.bf16.msra.mxu3 %v776_v2  ;;  %v770_v23 = vld [vmem:[%s1021_s8 + $0x78] sm:$0xff] }
  0x19   : > { %409 = vmatpush.bf16.msra.mxu0 %v775_v3  ;;  %883 = vmatpush.bf16.msra.mxu1 %v775_v3 }
  0x1a   : > { %884 = vmatpush.bf16.msra.mxu2 %v775_v3  ;;  %885 = vmatpush.bf16.msra.mxu3 %v775_v3 }
  0x1d   : > { %410 = vmatpush.bf16.msra.mxu0 %v774_v4  ;;  %886 = vmatpush.bf16.msra.mxu1 %v774_v4 }
  0x1e   : > { %887 = vmatpush.bf16.msra.mxu2 %v774_v4  ;;  %888 = vmatpush.bf16.msra.mxu3 %v774_v4 }
  0x21   : > { %411 = vmatpush.bf16.msra.mxu0 %v773_v5  ;;  %889 = vmatpush.bf16.msra.mxu1 %v773_v5 }
  0x22   : > { %890 = vmatpush.bf16.msra.mxu2 %v773_v5  ;;  %891 = vmatpush.bf16.msra.mxu3 %v773_v5 }
  0x25   : > { %412 = vmatpush.bf16.msra.mxu0 %v772_v6  ;;  %892 = vmatpush.bf16.msra.mxu1 %v772_v6 }
  0x26   : > { %893 = vmatpush.bf16.msra.mxu2 %v772_v6  ;;  %894 = vmatpush.bf16.msra.mxu3 %v772_v6 }
  0x29   : > { %413 = vmatpush.bf16.msra.mxu0 %v771_v7  ;;  %895 = vmatpush.bf16.msra.mxu1 %v771_v7 }
  0x2a   : > { %896 = vmatpush.bf16.msra.mxu2 %v771_v7  ;;  %897 = vmatpush.bf16.msra.mxu3 %v771_v7 }
  0x2c   : > { %414 = vmatmul.bf16.vlgmr.msra.gmra.mxu0 %v755_v8  ;;  %434 = vmatmul.bf16.vlgmr.msra.gmra.mxu1 %v759_v9 }
  0x2d   : > { %454 = vmatmul.bf16.vlgmr.msra.gmra.mxu2 %v763_v10  ;;  %474 = vmatmul.bf16.vlgmr.msra.gmra.mxu3 %v767_v11 }
  0x3c   : > { %419 = vmatmul.bf16.gmra.mxu0 %v756_v12  ;;  %439 = vmatmul.bf16.gmra.mxu1 %v760_v13 }
  0x3d   : > { %459 = vmatmul.bf16.gmra.mxu2 %v764_v14  ;;  %479 = vmatmul.bf16.gmra.mxu3 %v768_v15 }
  0x4c   : > { %424 = vmatmul.bf16.gmra.mxu0 %v757_v16  ;;  %444 = vmatmul.bf16.gmra.mxu1 %v761_v17 }
  0x4d   : > { %464 = vmatmul.bf16.gmra.mxu2 %v765_v18  ;;  %484 = vmatmul.bf16.gmra.mxu3 %v769_v19 }
  0x5c   : > { %429 = vmatmul.bf16.gmra.mxu0 %v758_v20  ;;  %449 = vmatmul.bf16.gmra.mxu1 %v762_v21 }
  0x5d   : > { %469 = vmatmul.bf16.gmra.mxu2 %v766_v22  ;;  %489 = vmatmul.bf16.gmra.mxu3 %v770_v23 }
  0xa9   : > { %v415_v24 = vpop.f32.mrf.mxu0  ;;  %v435_v25 = vpop.f32.mrf.mxu1 }
  0xaa   : > { %v416_v31 = vadd.f32 %v1042_v26, %v415_v24  ;;  %v436_v32 = vadd.f32 %v1042_v26, %v435_v25 }
  0xb0   : > { %v455_v27 = vpop.f32.mrf.mxu2  ;;  %v475_v28 = vpop.f32.mrf.mxu3 }
  0xb1   : > { %v417_v29 = vpop.f32.mrf.mxu0  ;;  %v437_v30 = vpop.f32.mrf.mxu1  ;;  %v456_v39 = vadd.f32 %v1042_v26, %v455_v27  ;;  %v476_v40 = vadd.f32 %v1042_v26, %v475_v28 }
  0xb2   : > { %v418_v33 = vadd.f32 %v1042_v26, %v417_v29  ;;  %v438_v34 = vadd.f32 %v1042_v26, %v437_v30 }
  0xb4   : > { %v782_v35 = vpack.c.bf16 %v418_v33, %v416_v31  ;;  %v802_v36 = vpack.c.bf16 %v438_v34, %v436_v32 }
  0xb6   : > { %783 = vst [vmem:[%s1053_s17] sm:$0xff] %v782_v35  }
  0xb7   : > { %862 = vst [vmem:[%s1053_s17 + $0x20] sm:$0xff] %v802_v36  }
  0xb8   : > { %v457_v37 = vpop.f32.mrf.mxu2  ;;  %v477_v38 = vpop.f32.mrf.mxu3 }
  0xb9   : > { %v458_v41 = vadd.f32 %v1042_v26, %v457_v37  ;;  %v478_v42 = vadd.f32 %v1042_v26, %v477_v38  ;;  %v420_v43 = vpop.f32.mrf.mxu0  ;;  %v440_v44 = vpop.f32.mrf.mxu1 }
  0xba   : > { %v421_v51 = vadd.f32 %v1042_v26, %v420_v43  ;;  %v441_v52 = vadd.f32 %v1042_v26, %v440_v44 }
  0xbb   : > { %v822_v45 = vpack.c.bf16 %v458_v41, %v456_v39  ;;  %v842_v46 = vpack.c.bf16 %v478_v42, %v476_v40 }
  0xbd   : > { %866 = vst [vmem:[%s1053_s17 + $0x40] sm:$0xff] %v822_v45  }
  0xbe   : > { %870 = vst [vmem:[%s1053_s17 + $0x60] sm:$0xff] %v842_v46  }
  0xc0   : > { %v460_v47 = vpop.f32.mrf.mxu2  ;;  %v480_v48 = vpop.f32.mrf.mxu3 }
  0xc1   : > { %v422_v49 = vpop.f32.mrf.mxu0  ;;  %v442_v50 = vpop.f32.mrf.mxu1  ;;  %v461_v59 = vadd.f32 %v1042_v26, %v460_v47  ;;  %v481_v60 = vadd.f32 %v1042_v26, %v480_v48 }
  0xc2   : > { %v423_v53 = vadd.f32 %v1042_v26, %v422_v49  ;;  %v443_v54 = vadd.f32 %v1042_v26, %v442_v50 }
  0xc4   : > { %v787_v55 = vpack.c.bf16 %v423_v53, %v421_v51  ;;  %v807_v56 = vpack.c.bf16 %v443_v54, %v441_v52 }
  0xc6   : > { %859 = vst [vmem:[%s1053_s17 + $0x8] sm:$0xff] %v787_v55  }
  0xc7   : > { %863 = vst [vmem:[%s1053_s17 + $0x28] sm:$0xff] %v807_v56  }
  0xc8   : > { %v462_v57 = vpop.f32.mrf.mxu2  ;;  %v482_v58 = vpop.f32.mrf.mxu3 }
  0xc9   : > { %v463_v61 = vadd.f32 %v1042_v26, %v462_v57  ;;  %v483_v62 = vadd.f32 %v1042_v26, %v482_v58  ;;  %v425_v63 = vpop.f32.mrf.mxu0  ;;  %v445_v0 = vpop.f32.mrf.mxu1 }
  0xca   : > { %v426_v7 = vadd.f32 %v1042_v26, %v425_v63  ;;  %v446_v8 = vadd.f32 %v1042_v26, %v445_v0 }
  0xcb   : > { %v827_v1 = vpack.c.bf16 %v463_v61, %v461_v59  ;;  %v847_v2 = vpack.c.bf16 %v483_v62, %v481_v60 }
  0xcd   : > { %867 = vst [vmem:[%s1053_s17 + $0x48] sm:$0xff] %v827_v1  }
  0xce   : > { %871 = vst [vmem:[%s1053_s17 + $0x68] sm:$0xff] %v847_v2  }
  0xd0   : > { %v465_v3 = vpop.f32.mrf.mxu2  ;;  %v485_v4 = vpop.f32.mrf.mxu3 }
  0xd1   : > { %v427_v5 = vpop.f32.mrf.mxu0  ;;  %v447_v6 = vpop.f32.mrf.mxu1  ;;  %v466_v15 = vadd.f32 %v1042_v26, %v465_v3  ;;  %v486_v16 = vadd.f32 %v1042_v26, %v485_v4 }
  0xd2   : > { %v428_v9 = vadd.f32 %v1042_v26, %v427_v5  ;;  %v448_v10 = vadd.f32 %v1042_v26, %v447_v6 }
  0xd4   : > { %v792_v11 = vpack.c.bf16 %v428_v9, %v426_v7  ;;  %v812_v12 = vpack.c.bf16 %v448_v10, %v446_v8 }
  0xd6   : > { %860 = vst [vmem:[%s1053_s17 + $0x10] sm:$0xff] %v792_v11  }
  0xd7   : > { %864 = vst [vmem:[%s1053_s17 + $0x30] sm:$0xff] %v812_v12  }
  0xd8   : > { %v467_v13 = vpop.f32.mrf.mxu2  ;;  %v487_v14 = vpop.f32.mrf.mxu3 }
  0xd9   : > { %v468_v17 = vadd.f32 %v1042_v26, %v467_v13  ;;  %v488_v18 = vadd.f32 %v1042_v26, %v487_v14  ;;  %v430_v19 = vpop.f32.mrf.mxu0  ;;  %v450_v20 = vpop.f32.mrf.mxu1 }
  0xda   : > { %v431_v28 = vadd.f32 %v1042_v26, %v430_v19  ;;  %v451_v29 = vadd.f32 %v1042_v26, %v450_v20 }
  0xdb   : > { %v832_v21 = vpack.c.bf16 %v468_v17, %v466_v15  ;;  %v852_v22 = vpack.c.bf16 %v488_v18, %v486_v16 }
  0xdd   : > { %868 = vst [vmem:[%s1053_s17 + $0x50] sm:$0xff] %v832_v21  }
  0xde   : > { %872 = vst [vmem:[%s1053_s17 + $0x70] sm:$0xff] %v852_v22  }
  0xe0   : > { %v470_v23 = vpop.f32.mrf.mxu2  ;;  %v490_v24 = vpop.f32.mrf.mxu3 }
  0xe1   : > { %v432_v25 = vpop.f32.mrf.mxu0  ;;  %v452_v27 = vpop.f32.mrf.mxu1  ;;  %v471_v36 = vadd.f32 %v1042_v26, %v470_v23  ;;  %v491_v37 = vadd.f32 %v1042_v26, %v490_v24 }
  0xe2   : > { %v433_v30 = vadd.f32 %v1042_v26, %v432_v25  ;;  %v453_v31 = vadd.f32 %v1042_v26, %v452_v27 }
  0xe4   : > { %v797_v32 = vpack.c.bf16 %v433_v30, %v431_v28  ;;  %v817_v33 = vpack.c.bf16 %v453_v31, %v451_v29 }
  0xe6   : > { %861 = vst [vmem:[%s1053_s17 + $0x18] sm:$0xff] %v797_v32  }
  0xe7   : > { %865 = vst [vmem:[%s1053_s17 + $0x38] sm:$0xff] %v817_v33  }
  0xe8   : > { %v472_v34 = vpop.f32.mrf.mxu2  ;;  %v492_v35 = vpop.f32.mrf.mxu3 }
  0xe9   : > { %v473_v38 = vadd.f32 %v1042_v26, %v472_v34  ;;  %v493_v39 = vadd.f32 %v1042_v26, %v492_v35 }
  0xeb   : > { %v837_v40 = vpack.c.bf16 %v473_v38, %v471_v36  ;;  %v857_v41 = vpack.c.bf16 %v493_v39, %v491_v37 }
  0xed   : > { %869 = vst [vmem:[%s1053_s17 + $0x58] sm:$0xff] %v837_v40  }
  0xee   : > { %873 = vst [vmem:[%s1053_s17 + $0x78] sm:$0xff] %v857_v41  }
  0xef PF: > { %s13_s14 = sadd.s32 1, %s945_s14   ;;  %s1112_s12 = smov %s941_s13 }
  0xf0   : > { %p10_p5 = scmp.ge.s32.totalorder %s13_s14, 4   ;;  %s1113_s13 = smov %s1115_s15 }
  0xf2   :  { %12 = sbr.rel (!%p10_p5) target bundleno = 2 (0x2), region = 62 }

</bundles_post_ra>
